<compile_context>
chip_gen: v6e
topology: v6e:2x2x1
jax: 0.10.0
libtpu: 0.0.40
codegen_flags: <defaults>
</compile_context>

<pallas_src>
import functools

import jax
import jax.numpy as jnp
from jax.experimental import pallas as pl
from jax.experimental.pallas import tpu as pltpu

H_PAD = 128          # hidden width padded 100 -> 128 (one lane-dense vreg column)
TB_DEFAULT = 256     # batch tile; bf16 x tile = 256*784*2B ~= 0.4 MiB (x2 buffers)


def _round_up(n, m):
    return ((n + m - 1) // m) * m


def mlp_kernel(x_ref, w1t_ref, w2t_ref, o_ref, *, apply_softmax):
    # x_ref:   [TB, 784]      bf16 (VMEM, tiled over batch)
    # w1t_ref: [784, H_PAD]   bf16 (VMEM-resident, W1.T zero-padded to 128 cols)
    # w2t_ref: [H_PAD, 10]    bf16 (VMEM-resident, W2.T zero-padded rows)
    # o_ref:   [TB, 10]       f32
    h = jnp.dot(x_ref[...], w1t_ref[...], preferred_element_type=jnp.float32)
    h = jnp.maximum(h, 0.0)                                 # ReLU on the VPU
    out = jnp.dot(h.astype(w2t_ref.dtype), w2t_ref[...],
                  preferred_element_type=jnp.float32)
    if apply_softmax:
        m = jnp.max(out, axis=-1, keepdims=True)
        e = jnp.exp(out - m)                                # EUP
        s = jnp.sum(e, axis=-1, keepdims=True)              # XLU
        out = e * pl.reciprocal(s, approx=True)             # EUP vrcp
    o_ref[...] = out.astype(o_ref.dtype)


def prepare_params(w1, w2, dtype=jnp.bfloat16):
    """One-time parameter prep (hoisted out of the per-call path).

    w1: [100, 784] (torch nn.Linear(784, 100, bias=False).weight)
    w2: [10, 100]  (torch nn.Linear(100, 10,  bias=False).weight)
    Returns (w1t_padded [784,128], w2t_padded [128,10]) in bf16. The zero pad
    rows/cols keep results bit-identical to the unpadded math.
    """
    w1t = jnp.zeros((784, H_PAD), dtype).at[:, :100].set(w1.T.astype(dtype))
    w2t = jnp.zeros((H_PAD, 10), dtype).at[:100, :].set(w2.T.astype(dtype))
    return w1t, w2t


def _mlp_pallas(x, w1t, w2t, *, apply_softmax, tb=TB_DEFAULT):
    B = x.shape[0]
    tb = min(tb, _round_up(B, 8))          # small batches: one tile, 8-row aligned
    b_pad = _round_up(B, tb)

    x = x.astype(w1t.dtype)                # bf16 at the boundary
    if b_pad != B:
        x = jnp.pad(x, ((0, b_pad - B), (0, 0)))

    kernel = functools.partial(mlp_kernel, apply_softmax=apply_softmax)
    out = pl.pallas_call(
        kernel,
        out_shape=jax.ShapeDtypeStruct((b_pad, 10), jnp.float32),
        grid_spec=pl.GridSpec(
            grid=(b_pad // tb,),
            in_specs=[
                pl.BlockSpec((tb, 784), lambda i: (i, 0)),      # x tile (pipelined)
                pl.BlockSpec((784, H_PAD), lambda i: (0, 0)),   # W1^T (resident)
                pl.BlockSpec((H_PAD, 10), lambda i: (0, 0)),    # W2^T (resident)
            ],
            out_specs=pl.BlockSpec((tb, 10), lambda i: (i, 0)),
        ),
        compiler_params=pltpu.CompilerParams(
            dimension_semantics=("parallel",),   # shard batch across TCs (v7x)
        ),
    )(x, w1t, w2t)
    return out[:B]


def nets_forward(x, w1t, w2t, *, tb=TB_DEFAULT):
    """Equivalent of Nets.forward: logits [B, 10] (f32)."""
    return _mlp_pallas(x, w1t, w2t, apply_softmax=False, tb=tb)


def nets_predict(x, w1t, w2t, *, tb=TB_DEFAULT):
    """Equivalent of Nets.predict: softmax(dim=1) fused into the kernel."""
    return _mlp_pallas(x, w1t, w2t, apply_softmax=True, tb=tb)


if __name__ == "__main__":
    key = jax.random.PRNGKey(0)
    kx, k1, k2 = jax.random.split(key, 3)

    B = 8  # small demo batch (multiple of 8 sublanes)
    x = jax.random.normal(kx, (B, 784), dtype=jnp.float32)

    # Deterministic synthetic weights matching nn.Linear shapes (bias=False).
    w1 = jax.random.uniform(k1, (100, 784), dtype=jnp.float32,
                            minval=-1.0, maxval=1.0) * (1.0 / jnp.sqrt(784.0))
    w2 = jax.random.uniform(k2, (10, 100), dtype=jnp.float32,
                            minval=-1.0, maxval=1.0) * (1.0 / jnp.sqrt(100.0))

    # One-time param prep (transpose + pad + bf16), reused across calls.
    w1t, w2t = prepare_params(w1, w2)

    logits = nets_forward(x, w1t, w2t)
    jax.block_until_ready(logits)
    assert logits.shape == (B, 10)

    # Reference in plain JAX (f32); bf16 inputs => looser tolerance.
    ref = jnp.maximum(x @ w1.T, 0.0) @ w2.T
    assert jnp.allclose(logits, ref, atol=2e-2, rtol=2e-2), (
        float(jnp.max(jnp.abs(logits - ref))))

    probs = nets_predict(x, w1t, w2t)
    jax.block_until_ready(probs)
    assert probs.shape == (B, 10)
    assert jnp.allclose(jnp.sum(probs, axis=1), 1.0, atol=1e-2)
    ref_probs = jax.nn.softmax(ref, axis=1)
    assert jnp.allclose(probs, ref_probs, atol=2e-2, rtol=2e-2)

    # Larger-batch smoke test (exercises batch tiling / pipelining path).
    Bl = 1000  # deliberately not a multiple of the tile
    xl = jax.random.normal(kx, (Bl, 784), dtype=jnp.float32)
    logits_l = nets_forward(xl, w1t, w2t)
    jax.block_until_ready(logits_l)
    ref_l = jnp.maximum(xl @ w1.T, 0.0) @ w2.T
    assert logits_l.shape == (Bl, 10)
    assert jnp.allclose(logits_l, ref_l, atol=3e-2, rtol=3e-2)

    print("KERNEL_OK")
</pallas_src>

<mosaic_0001>
module attributes {stable_mosaic.version = 11 : i64} {
  func.func @mlp_kernel(%arg0: i32, %arg1: memref<8x784xbf16, #tpu.memory_space<vmem>>, %arg2: memref<784x128xbf16, #tpu.memory_space<vmem>>, %arg3: memref<128x10xbf16, #tpu.memory_space<vmem>>, %arg4: memref<8x10xf32, #tpu.memory_space<vmem>>) attributes {dimension_semantics = [#tpu.dimension_semantics<parallel>], iteration_bounds = array<i64: 1>, scalar_prefetch = 0 : i64, scratch_operands = 0 : i64, tpu.core_type = #tpu.core_type<tc>, window_params = [{transform_indices = @transform_0, window_bounds = array<i64: 8, 784>}, {pipeline_mode = #tpu.pipeline_mode<synchronous>, transform_indices = @transform_1, window_bounds = array<i64: 784, 128>}, {pipeline_mode = #tpu.pipeline_mode<synchronous>, transform_indices = @transform_2, window_bounds = array<i64: 128, 10>}, {transform_indices = @transform_3, window_bounds = array<i64: 8, 10>}]} {
    %c0 = arith.constant 0 : index
    %c0_0 = arith.constant 0 : index
    %0 = vector.load %arg1[%c0, %c0_0] : memref<8x784xbf16, #tpu.memory_space<vmem>>, vector<8x784xbf16>
    %c0_1 = arith.constant 0 : index
    %c0_2 = arith.constant 0 : index
    %1 = vector.load %arg2[%c0_1, %c0_2] : memref<784x128xbf16, #tpu.memory_space<vmem>>, vector<784x128xbf16>
    %cst = arith.constant dense<0.000000e+00> : vector<8x128xf32>
    %2 = tpu.matmul %0, %1, %cst {dimension_numbers = #tpu.dot_dimension_numbers<[1], [0], [0], [1], [0, 0, 1, 1], [], []>} : vector<8x784xbf16>, vector<784x128xbf16>, vector<8x128xf32> -> vector<8x128xf32>
    %cst_3 = arith.constant 0.000000e+00 : f32
    %3 = vector.broadcast %cst_3 : f32 to vector<8x128xf32>
    %4 = arith.maximumf %2, %3 : vector<8x128xf32>
    %5 = arith.truncf %4 : vector<8x128xf32> to vector<8x128xbf16>
    %c0_4 = arith.constant 0 : index
    %c0_5 = arith.constant 0 : index
    %6 = vector.load %arg3[%c0_4, %c0_5] : memref<128x10xbf16, #tpu.memory_space<vmem>>, vector<128x10xbf16>
    %cst_6 = arith.constant dense<0.000000e+00> : vector<8x10xf32>
    %7 = tpu.matmul %5, %6, %cst_6 {dimension_numbers = #tpu.dot_dimension_numbers<[1], [0], [0], [1], [0, 0, 1, 1], [], []>} : vector<8x128xbf16>, vector<128x10xbf16>, vector<8x10xf32> -> vector<8x10xf32>
    %c0_7 = arith.constant 0 : index
    %c0_8 = arith.constant 0 : index
    %8 = vector.load %arg4[%c0_7, %c0_8] : memref<8x10xf32, #tpu.memory_space<vmem>>, vector<8x10xf32>
    tpu.vector_store %arg4[%c0_7, %c0_8], %7 {strides = array<i32>} : memref<8x10xf32, #tpu.memory_space<vmem>>, vector<8x10xf32>,
    return
  }
  func.func @transform_0(%arg0: i32) -> (i32, i32) {
    %c0_i32 = arith.constant 0 : i32
    %c0_i32_0 = arith.constant 0 : i32
    return %arg0, %c0_i32 : i32, i32
  }
  func.func @transform_1(%arg0: i32) -> (i32, i32) {
    %c0_i32 = arith.constant 0 : i32
    %c0_i32_0 = arith.constant 0 : i32
    %c0_i32_1 = arith.constant 0 : i32
    return %c0_i32, %c0_i32_0 : i32, i32
  }
  func.func @transform_2(%arg0: i32) -> (i32, i32) {
    %c0_i32 = arith.constant 0 : i32
    %c0_i32_0 = arith.constant 0 : i32
    %c0_i32_1 = arith.constant 0 : i32
    return %c0_i32, %c0_i32_0 : i32, i32
  }
  func.func @transform_3(%arg0: i32) -> (i32, i32) {
    %c0_i32 = arith.constant 0 : i32
    %c0_i32_0 = arith.constant 0 : i32
    return %arg0, %c0_i32 : i32, i32
  }
}

</mosaic_0001>

<bundles_post_ra>
// kernel: tpu_custom_call.1
= control target key start
LH: loop header
LB: loop body
LE: loop exit
PB: predicated region body
PF: predicated region fallthrough
CT: control target
= control target key end

     0   :  { %8 = vsyncpa [#allocation3], 0  ;;  %s1100_s0 = inlined_call_operand.vmem [shape: bf16[8,784], index: 0, kind: input, shape index: {}]   ;;  %s1101_s1 = inlined_call_operand.hbm [shape: bf16[784,128], index: 1, kind: input, shape index: {}]   ;;  %s1102_s2 = inlined_call_operand.vmem [shape: bf16[128,10], index: 2, kind: input, shape index: {}]   ;;  %s1103_s3 = inlined_call_operand.hbm [shape: f32[8,10], index: 3, kind: output, shape index: {}]  }
   0x1   :  { %9 = vsyncpa [#allocation4], 0  ;;  %s1019_s12 = smov [#allocation2]  }
   0x2   :  { %s17_s13 = sshll.u32 %s1019_s12, 4  ;;  %s18_s13 = int_to_ptr.vmem [resolvable:$true] %s17_s13 }
   0x3   :  { %s983_s14 = scalar_lea.vmem %s18_s13, 6272  ;;  %p988_p1 = scmp.lt.s32.totalorder %s18_s13, %s18_s13 }
   0x4   :  { %p984_p0 = scmp.ne.s32.totalorder %s18_s13, %s983_s14  ;;  %p989_p2 = scmp.lt.s32.totalorder %s983_s14, %s983_s14 }
   0x6   :  { %p990_p3 = por %p989_p2, %p988_p1 }
   0x8   :  { %p991_p4 = pnand %p990_p3, %p984_p0 }
   0xa   :  { %994 = shalt.err (!%p991_p4)
}
   0xb   :  { %s1020_s15 = smov 64   ;;  %s1021_s16 = smov 4  }
   0xc   :  { %23 = dma.hbm_to_vmem [thread:$0]  %s1101_s1, 6272, %s18_s13, [#allocation3], %s1020_s15, %s1020_s15, %s1021_s16  }
   0xd   :  { %1015 = dma.done.wait [#allocation3], 6272  }
   0xe   :  { %1016 = vsyncadd [#allocation3], 4294961024  ;;  %v911_v0 = vld [vmem:[#allocation2 + $0x78] sm:$0xff]   ;;  %v915_v4 = vld [vmem:[#allocation2 + $0x70] sm:$0xff]   ;;  %v1022_v40 = vmov 0.0   ;;  %vm1023_vm0 = vmmov 0  }
   0xf   :  { %v912_v1 = vld [vmem:[#allocation2 + $0xf8] sm:$0xff]   ;;  %802 = vmatprep.subr.bf16.mxu0 %v911_v0  ;;  %v916_v5 = vld [vmem:[#allocation2 + $0xf0] sm:$0xff]   ;;  %v919_v8 = vld [vmem:[#allocation2 + $0x68] sm:$0xff]   ;;  %vm450_vm1 = vcmask 130048   ;;  %vm720_vm2 = vcmask 80896  }
  0x10   :  { %v913_v2 = vld [vmem:[#allocation2 + $0x38] sm:$0xff]   ;;  %824 = vmatprep.subr.bf16.mxu1 %v912_v1  ;;  %v917_v6 = vld [vmem:[#allocation2 + $0x30] sm:$0xff]   ;;  %v920_v9 = vld [vmem:[#allocation2 + $0xe8] sm:$0xff]  }
  0x11   :  { %v914_v3 = vld [vmem:[#allocation2 + $0xb8] sm:$0xff]   ;;  %803 = vmatpush3.bf16.msra.mxu0 %v913_v2  ;;  %v918_v7 = vld [vmem:[#allocation2 + $0xb0] sm:$0xff]   ;;  %v921_v10 = vld [vmem:[#allocation2 + $0x28] sm:$0xff]  }
  0x12   :  { %825 = vmatpush3.bf16.msra.mxu1 %v914_v3  ;;  %804 = vmatprep.subr.bf16.mxu0 %v915_v4  ;;  %v922_v11 = vld [vmem:[#allocation2 + $0xa8] sm:$0xff]   ;;  %v923_v12 = vld [vmem:[#allocation2 + $0x60] sm:$0xff]   ;;  %v927_v16 = vld [vmem:[#allocation2 + $0x58] sm:$0xff]  }
  0x13   :  { %826 = vmatprep.subr.bf16.mxu1 %v916_v5  ;;  %v924_v13 = vld [vmem:[#allocation2 + $0xe0] sm:$0xff]   ;;  %v928_v17 = vld [vmem:[#allocation2 + $0xd8] sm:$0xff]   ;;  %v931_v20 = vld [vmem:[#allocation2 + $0x50] sm:$0xff]  }
  0x14   :  { %v925_v14 = vld [vmem:[#allocation2 + $0x20] sm:$0xff]   ;;  %v929_v18 = vld [vmem:[#allocation2 + $0x18] sm:$0xff]   ;;  %v932_v21 = vld [vmem:[#allocation2 + $0xd0] sm:$0xff]  }
  0x15   :  { %805 = vmatpush3.bf16.msra.mxu0 %v917_v6  ;;  %v926_v15 = vld [vmem:[#allocation2 + $0xa0] sm:$0xff]   ;;  %v930_v19 = vld [vmem:[#allocation2 + $0x98] sm:$0xff]   ;;  %v933_v22 = vld [vmem:[#allocation2 + $0x10] sm:$0xff]  }
  0x16   :  { %827 = vmatpush3.bf16.msra.mxu1 %v918_v7  ;;  %806 = vmatprep.subr.bf16.mxu0 %v919_v8  ;;  %v934_v23 = vld [vmem:[#allocation2 + $0x90] sm:$0xff]   ;;  %v935_v24 = vld [vmem:[#allocation2 + $0x48] sm:$0xff]   ;;  %v939_v28 = vld [vmem:[#allocation2 + $0x40] sm:$0xff]  }
  0x17   :  { %828 = vmatprep.subr.bf16.mxu1 %v920_v9  ;;  %v936_v25 = vld [vmem:[#allocation2 + $0xc8] sm:$0xff]   ;;  %v940_v29 = vld [vmem:[#allocation2 + $0xc0] sm:$0xff]   ;;  %v947_v38 = vld [vmem:[#allocation2 + $0x178] sm:$0xff]  }
  0x18   :  { %v937_v26 = vld [vmem:[#allocation2 + $0x8] sm:$0xff]   ;;  %v941_v30 = vld [vmem:[#allocation2] sm:$0xff]   ;;  %v948_v39 = vld [vmem:[#allocation2 + $0x138] sm:$0xff]  }
  0x19   :  { %807 = vmatpush3.bf16.msra.mxu0 %v921_v10  ;;  %v938_v27 = vld [vmem:[#allocation2 + $0x88] sm:$0xff]   ;;  %v942_v31 = vld [vmem:[#allocation2 + $0x80] sm:$0xff]   ;;  %v949_v41 = vld [vmem:[#allocation2 + $0x170] sm:$0xff]  }
  0x1a   :  { %829 = vmatpush3.bf16.msra.mxu1 %v922_v11  ;;  %808 = vmatprep.subr.bf16.mxu0 %v923_v12  ;;  %v30_v32 = vld [vmem:[%s1100_s0] sm:$0xff]  ;;  %v31_v33 = vld [vmem:[%s1100_s0 + $0x8] sm:$0xff]  ;;  %v950_v42 = vld [vmem:[#allocation2 + $0x130] sm:$0xff]  }
  0x1b   :  { %830 = vmatprep.subr.bf16.mxu1 %v924_v13  ;;  %v737_v34 = vcombine.low %v30_v32, %v30_v32  ;;  %v738_v35 = vcombine.high %v30_v32, %v30_v32  ;;  %v739_v36 = vcombine.low %v31_v33, %v31_v33  ;;  %v740_v37 = vcombine.high %v31_v33, %v31_v33  ;;  %v951_v43 = vld [vmem:[#allocation2 + $0x168] sm:$0xff]   ;;  %v953_v45 = vld [vmem:[#allocation2 + $0x160] sm:$0xff]   ;;  %v955_v47 = vld [vmem:[#allocation2 + $0x158] sm:$0xff]  }
  0x1c   :  { %v952_v44 = vld [vmem:[#allocation2 + $0x128] sm:$0xff]   ;;  %v954_v46 = vld [vmem:[#allocation2 + $0x120] sm:$0xff]   ;;  %v956_v48 = vld [vmem:[#allocation2 + $0x118] sm:$0xff]  }
  0x1d   :  { %809 = vmatpush3.bf16.msra.mxu0 %v925_v14  ;;  %486 = vmatprep.mubr.bf16.mxu0 %v738_v35  ;;  %v957_v49 = vld [vmem:[#allocation2 + $0x150] sm:$0xff]   ;;  %v963_v50 = vld [vmem:[#allocation2 + $0x180] sm:$0xff]   ;;  %v966_v53 = vld [vmem:[%s1100_s0 + $0x18] ss:$0 sps:$4 sm:$0xff]  }
  0x1e   :  { %831 = vmatpush3.bf16.msra.mxu1 %v926_v15  ;;  %810 = vmatprep.subr.bf16.mxu0 %v927_v16  ;;  %v32_v51 = vld [vmem:[%s1100_s0 + $0x10] sm:$0xff]  ;;  %v959_v55 = vld [vmem:[#allocation2 + $0x148] sm:$0xff]   ;;  %v961_v57 = vld [vmem:[#allocation2 + $0x140] sm:$0xff]  }
  0x1f   :  { %832 = vmatprep.subr.bf16.mxu1 %v928_v17  ;;  %526 = vmatprep.mubr.bf16.mxu1 %v740_v37  ;;  %v742_v52 = vcombine.high %v32_v51, %v32_v51  ;;  %v958_v54 = vld [vmem:[#allocation2 + $0x110] sm:$0xff]   ;;  %v960_v56 = vld [vmem:[#allocation2 + $0x108] sm:$0xff]   ;;  %v962_v58 = vld [vmem:[#allocation2 + $0x100] sm:$0xff]   ;;  %v741_v59 = vcombine.low %v32_v51, %v32_v51 }
  0x20   :  { %v967_v60 = vld [vmem:[%s1102_s2 + $0x38] sm:$0xff]   ;;  %v968_v61 = vld [vmem:[%s1102_s2 + $0x30] sm:$0xff]   ;;  %v969_v62 = vld [vmem:[%s1102_s2 + $0x28] sm:$0xff]  }
  0x21   :  { %811 = vmatpush3.bf16.msra.mxu0 %v929_v18  ;;  %v970_v63 = vld [vmem:[%s1102_s2 + $0x20] sm:$0xff]   ;;  %v971_v0 = vld [vmem:[%s1102_s2 + $0x18] sm:$0xff]   ;;  %v972_v1 = vld [vmem:[%s1102_s2 + $0x10] sm:$0xff]  }
  0x22   :  { %833 = vmatpush3.bf16.msra.mxu1 %v930_v19  ;;  %812 = vmatprep.subr.bf16.mxu0 %v931_v20  ;;  %v973_v2 = vld [vmem:[%s1102_s2 + $0x8] sm:$0xff]   ;;  %v974_v3 = vld [vmem:[%s1102_s2] sm:$0xff]   ;;  %s1024_s2 = smov [#allocation5]  }
  0x23   :  { %834 = vmatprep.subr.bf16.mxu1 %v932_v21  ;;  %s728_s14 = sshll.u32 %s1024_s2, 4  ;;  %s729_s14 = int_to_ptr.vmem [resolvable:$true] %s728_s14 }
  0x24   :  { %s995_s15 = scalar_lea.vmem %s729_s14, 128  ;;  %p1000_p6 = scmp.lt.s32.totalorder %s729_s14, %s729_s14 }
  0x25   :  { %813 = vmatpush3.bf16.msra.mxu0 %v933_v22  ;;  %p996_p5 = scmp.ne.s32.totalorder %s729_s14, %s995_s15  ;;  %p1001_p7 = scmp.lt.s32.totalorder %s995_s15, %s995_s15 }
  0x26   :  { %835 = vmatpush3.bf16.msra.mxu1 %v934_v23  ;;  %814 = vmatprep.subr.bf16.mxu0 %v935_v24 }
  0x27   :  { %836 = vmatprep.subr.bf16.mxu1 %v936_v25  ;;  %p1002_p8 = por %p1001_p7, %p1000_p6 }
  0x29   :  { %815 = vmatpush3.bf16.msra.mxu0 %v937_v26  ;;  %p1003_p9 = pnand %p1002_p8, %p996_p5 }
  0x2a   :  { %837 = vmatpush3.bf16.msra.mxu1 %v938_v27  ;;  %816 = vmatprep.subr.bf16.mxu0 %v939_v28 }
  0x2b   :  { %838 = vmatprep.subr.bf16.mxu1 %v940_v29 }
  0x2d   :  { %817 = vmatpush3.bf16.msra.mxu0 %v941_v30 }
  0x2e   :  { %839 = vmatpush3.bf16.msra.mxu1 %v942_v31  ;;  %846 = vmatprep.subr.bf16.mxu0 %v947_v38 }
  0x2f   :  { %879 = vmatprep.subr.bf16.mxu1 %v1022_v40 }
  0x30   :  { %487 = vmatmul.mubr.bf16.vlgmr.msra.gmra.mxu0 %v737_v34 }
  0x31   :  { %527 = vmatmul.mubr.bf16.vlgmr.msra.gmra.mxu1 %v739_v36  ;;  %847 = vmatpush3.bf16.msra.mxu0 %v948_v39 }
  0x32   :  { %881 = vmatprep.mubr.msk.bf16.mxu1 %vm1023_vm0, %v1022_v40  ;;  %848 = vmatprep.subr.bf16.mxu0 %v949_v41 }
  0x33   :  { %880 = vmatpush3.bf16.msra.mxu1 %v963_v50  ;;  %566 = vmatprep.mubr.bf16.mxu0 %v742_v52 }
  0x34   :  { %885 = vmatprep.subr.bf16.mxu1 %v1022_v40 }
  0x35   :  { %849 = vmatpush3.bf16.msra.mxu0 %v950_v42 }
  0x36   :  { %850 = vmatprep.subr.bf16.mxu0 %v951_v43 }
  0x39   :  { %851 = vmatpush3.bf16.msra.mxu0 %v952_v44  ;;  %882 = vmatmul.mubr.msk.bf16.vlgmr.msra.gmra.mxu1 %vm450_vm1, %v966_v53 }
  0x3a   :  { %852 = vmatprep.subr.bf16.mxu0 %v953_v45  ;;  %901 = vmatprep.mubr.msk.bf16.mxu1 %vm1023_vm0, %v1022_v40 }
  0x3b   :  { %886 = vmatpush3.bf16.msra.mxu1 %v967_v60 }
  0x3c   :  { %887 = vmatprep.subr.bf16.mxu1 %v1022_v40 }
  0x3d   :  { %853 = vmatpush3.bf16.msra.mxu0 %v954_v46 }
  0x3e   :  { %854 = vmatprep.subr.bf16.mxu0 %v955_v47 }
  0x3f   :  { %888 = vmatpush3.bf16.msra.mxu1 %v968_v61 }
  0x40   :  { %889 = vmatprep.subr.bf16.mxu1 %v1022_v40 }
  0x41   :  { %855 = vmatpush3.bf16.msra.mxu0 %v956_v48 }
  0x42   :  { %856 = vmatprep.subr.bf16.mxu0 %v957_v49 }
  0x43   :  { %890 = vmatpush3.bf16.msra.mxu1 %v969_v62 }
  0x44   :  { %891 = vmatprep.subr.bf16.mxu1 %v1022_v40 }
  0x45   :  { %857 = vmatpush3.bf16.msra.mxu0 %v958_v54 }
  0x46   :  { %858 = vmatprep.subr.bf16.mxu0 %v959_v55 }
  0x47   :  { %892 = vmatpush3.bf16.msra.mxu1 %v970_v63 }
  0x48   :  { %893 = vmatprep.subr.bf16.mxu1 %v1022_v40 }
  0x49   :  { %859 = vmatpush3.bf16.msra.mxu0 %v960_v56 }
  0x4a   :  { %860 = vmatprep.subr.bf16.mxu0 %v961_v57 }
  0x4b   :  { %894 = vmatpush3.bf16.msra.mxu1 %v971_v0 }
  0x4c   :  { %895 = vmatprep.subr.bf16.mxu1 %v1022_v40 }
  0x4d   :  { %861 = vmatpush3.bf16.msra.mxu0 %v962_v58 }
  0x4f   :  { %896 = vmatpush3.bf16.msra.mxu1 %v972_v1 }
  0x50   :  { %567 = vmatmul.mubr.bf16.vlgmr.msra.gmra.mxu0 %v741_v59  ;;  %897 = vmatprep.subr.bf16.mxu1 %v1022_v40 }
  0x53   :  { %898 = vmatpush3.bf16.msra.mxu1 %v973_v2 }
  0x54   :  { %899 = vmatprep.subr.bf16.mxu1 %v1022_v40 }
  0x57   :  { %900 = vmatpush3.bf16.msra.mxu1 %v974_v3 }
  0xf0   :  { %v818_v4 = vpop.f32.mrf.mxu0 }
  0xf1   :  { %v840_v5 = vpop.f32.mrf.mxu1 }
  0xf2   :  { %v819_v6 = vpop.f32.mrf.mxu0 }
  0xf3   :  { %v841_v7 = vpop.f32.mrf.mxu1  ;;  %v820_v16 = vadd.f32 %v819_v6, %v818_v4 }
  0xf4   :  { %v821_v8 = vpop.f32.mrf.mxu0  ;;  %v842_v17 = vadd.f32 %v841_v7, %v840_v5 }
  0xf5   :  { %v843_v9 = vpop.f32.mrf.mxu1 }
  0xf6   :  { %v822_v10 = vpop.f32.mrf.mxu0  ;;  %v529_v20 = vadd.f32 %v842_v17, %v820_v16 }
  0xf7   :  { %v844_v11 = vpop.f32.mrf.mxu1 }
  0xf9   :  { %v608_v12 = vpop.f32.mrf.mxu1 }
  0xfb   :  { %v883_v13 = vpop.f32.mrf.mxu1 }
  0xfd   :  { %v611_v14 = vpop.f32.mrf.mxu1 }
  0xff   :  { %v884_v15 = vpop.f32.mrf.mxu1 }
 0x110   :  { %v862_v18 = vpop.f32.mrf.mxu0 }
 0x112   :  { %v863_v19 = vpop.f32.mrf.mxu0 }
 0x113   :  { %v864_v21 = vadd.f32 %v863_v19, %v862_v18 }
 0x114   :  { %v865_v22 = vpop.f32.mrf.mxu0 }
 0x115   :  { %v569_v23 = vadd.f32 %v864_v21, %v529_v20 }
 0x116   :  { %v866_v24 = vpop.f32.mrf.mxu0 }
 0x117   :  { %v609_v25 = vadd.f32 %v608_v12, %v569_v23 }
 0x119   :  { %v614_v26 = vmax.f32 %v609_v25, 0.0 }
 0x11b   :  { %v615_v27 = vpack.c.bf16 %v614_v26, %v614_v26 }
 0x11d   :  { %902 = vmatmul.mubr.bf16.vlgmr.msra.gmra.mxu1 %v615_v27 }
 0x1dd   :  { %v714_v28 = vpop.f32.mrf.mxu1 }
 0x1de   :  { %721 = vst.msk [vmem:[#allocation5] sm:$0xff] %vm720_vm2, %v714_v28 }
 0x1df   :  { %v903_v29 = vpop.f32.mrf.mxu1 }
 0x1e0   :  { %1006 = shalt.err (!%p1003_p9)
}
 0x1e1   :  { %731 = dma.vmem_to_hbm [thread:$0]  %s729_s14, 128, %s1103_s3, [#allocation4]   ;;  %v717_v30 = vpop.f32.mrf.mxu1 }
 0x1e3   :  { %v904_v31 = vpop.f32.mrf.mxu1 }
 0x1e4   :  { %1017 = dma.done.wait [#allocation4], 128  }
 0x1e5   :  { %1018 = vsyncadd [#allocation4], 4294967168 }
 0x1e6   :  { %735 = vsyncpa [#allocation3], 1 }
 0x1e7   :  { %736 = vsyncpa [#allocation4], 1 }

</bundles_post_ra>
